<compile_context>
chip_gen: v7x
topology: tpu7x:2x2x1
jax: 0.10.0
libtpu: 0.0.40
codegen_flags: <defaults>
</compile_context>

<pallas_src>
import functools
import math

import jax
import jax.numpy as jnp
from jax import lax
from jax.experimental import pallas as pl
from jax.experimental.pallas import tpu as pltpu

HEAD_PAD = 128      # lane-dense padded width of the fused mu|sigma head
SIGMA_MIN = 1e-6    # Actor.policy_noise
SIGMA_MAX = 1.0


def _full_spec(shape):
    """Whole-array block resident in VMEM (gridless call)."""
    return pl.BlockSpec(shape, lambda: tuple(0 for _ in shape),
                        memory_space=pltpu.MemorySpace.VMEM)


def _mlp_head(s_ref, w1_ref, b1_ref, w2_ref, b2_ref, wh_ref, bh_ref,
              *, input_dims, n_actions):
    """Shared trunk.  Returns the (B, HEAD_PAD) fused head in f32:
         cols [0, n)         -> mu
         cols [n, 2n)        -> sigma, already clamped to [1e-6, 1]
         cols [2n, HEAD_PAD) -> zeros (padding)."""
    x = s_ref[...]                                   # (B, input_dims) f32
    w1 = w1_ref[...]                                 # (input_dims, fc1) f32

    # fc1: K == 3 is a degenerate MXU shape -> unrolled VPU rank-1 FMAs.
    h1 = b1_ref[...]                                 # (1, fc1), broadcasts up
    for d in range(input_dims):
        h1 = h1 + x[:, d:d + 1] * w1[d:d + 1, :]
    h1 = jnp.maximum(h1, 0.0)

    # fc2: MXU matmul.  Weights stored bf16 (half DMA), upcast here, f32 accumulate.
    h2 = jnp.dot(h1, w2_ref[...].astype(jnp.float32),
                 preferred_element_type=jnp.float32) + b2_ref[...]
    h2 = jnp.maximum(h2, 0.0)

    # Fused mu|sigma head, zero-padded to HEAD_PAD lanes -> one MXU pass and one
    # unmasked lane-dense store.
    head = jnp.dot(h2, wh_ref[...].astype(jnp.float32),
                   preferred_element_type=jnp.float32) + bh_ref[...]

    # torch.clamp(sigma, 1e-6, 1) applied only to the sigma columns.
    col = lax.broadcasted_iota(jnp.int32, head.shape, 1)
    is_sigma = jnp.logical_and(col >= n_actions, col < 2 * n_actions)
    head = jnp.where(is_sigma, jnp.clip(head, SIGMA_MIN, SIGMA_MAX), head)
    return head


def actor_fwd_kernel(s_ref, w1_ref, b1_ref, w2_ref, b2_ref, wh_ref, bh_ref,
                     head_ref, *, input_dims, n_actions):
    head_ref[...] = _mlp_head(s_ref, w1_ref, b1_ref, w2_ref, b2_ref,
                              wh_ref, bh_ref, input_dims=input_dims,
                              n_actions=n_actions).astype(head_ref.dtype)


def actor_sample_kernel(s_ref, w1_ref, b1_ref, w2_ref, b2_ref, wh_ref, bh_ref,
                        eps_ref, out_ref, *, input_dims, n_actions, max_action):
    head = _mlp_head(s_ref, w1_ref, b1_ref, w2_ref, b2_ref, wh_ref, bh_ref,
                     input_dims=input_dims, n_actions=n_actions)
    mu = head[:, 0:n_actions]                        # (B, n)
    sigma = head[:, n_actions:2 * n_actions]         # (B, n), clamped
    eps = eps_ref[...]                               # (B, n) standard normal

    a_raw = mu + sigma * eps                         # rsample (reparameterized)
    t = jnp.tanh(a_raw)                              # EUP
    action = t * max_action

    # Normal(mu, sigma).log_prob(a_raw); note (a_raw - mu)/sigma == eps exactly.
    log_prob = -0.5 * eps * eps - jnp.log(sigma) - 0.5 * math.log(2.0 * math.pi)
    # tanh / max_action change-of-variables correction (as in the PyTorch code).
    log_prob = log_prob - jnp.log(max_action * (1.0 - t * t) + SIGMA_MIN)
    log_prob = jnp.sum(log_prob, axis=1, keepdims=True)          # (B, 1)

    # Single lane-dense (B, HEAD_PAD) output: [action | log_prob | zeros].
    out_ref[...] = jnp.zeros(out_ref.shape, out_ref.dtype)
    out_ref[:, 0:n_actions] = action.astype(out_ref.dtype)
    out_ref[:, n_actions:n_actions + 1] = log_prob.astype(out_ref.dtype)


def _cost_estimate(in_arrays, B, input_dims, fc1, fc2, transcendentals):
    flops = 2 * B * (input_dims * fc1 + fc1 * fc2 + fc2 * HEAD_PAD)
    bytes_accessed = (sum(int(a.size) * a.dtype.itemsize for a in in_arrays)
                      + B * HEAD_PAD * 4)
    return pl.CostEstimate(flops=flops, transcendentals=transcendentals,
                           bytes_accessed=bytes_accessed)


def actor_forward(state, params, n_actions):
    """Actor.forward(state) -> (mu, sigma)."""
    B, input_dims = state.shape
    fc1 = params["w1"].shape[1]
    fc2 = params["w2"].shape[1]
    in_arrays = (state, params["w1"], params["b1"], params["w2"], params["b2"],
                 params["w_head"], params["b_head"])
    head = pl.pallas_call(
        functools.partial(actor_fwd_kernel, input_dims=input_dims,
                          n_actions=n_actions),
        out_shape=jax.ShapeDtypeStruct((B, HEAD_PAD), jnp.float32),
        in_specs=[_full_spec(a.shape) for a in in_arrays],
        out_specs=_full_spec((B, HEAD_PAD)),
        cost_estimate=_cost_estimate(in_arrays, B, input_dims, fc1, fc2, 0),
    )(*in_arrays)
    mu = head[:, :n_actions]
    sigma = head[:, n_actions:2 * n_actions]
    return mu, sigma


def actor_sample_normal(state, params, noise, max_action, n_actions):
    """Actor.sample_normal(state, reparameterize=True) -> (action, log_probs)."""
    B, input_dims = state.shape
    fc1 = params["w1"].shape[1]
    fc2 = params["w2"].shape[1]
    in_arrays = (state, params["w1"], params["b1"], params["w2"], params["b2"],
                 params["w_head"], params["b_head"], noise)
    out = pl.pallas_call(
        functools.partial(actor_sample_kernel, input_dims=input_dims,
                          n_actions=n_actions, max_action=float(max_action)),
        out_shape=jax.ShapeDtypeStruct((B, HEAD_PAD), jnp.float32),
        in_specs=[_full_spec(a.shape) for a in in_arrays],
        out_specs=_full_spec((B, HEAD_PAD)),
        cost_estimate=_cost_estimate(in_arrays, B, input_dims, fc1, fc2,
                                     4 * B * n_actions),
    )(*in_arrays)
    action = out[:, :n_actions]
    log_probs = out[:, n_actions:n_actions + 1]
    return action, log_probs


def init_actor_params(key, input_dims, fc1_dims, fc2_dims, n_actions):
    """PyTorch-default (uniform +/- 1/sqrt(fan_in)) init.
    Weights are stored transposed as (in_features, out_features).  The fc2 and
    fused-head weights (the DMA-dominant blocks) are stored in bfloat16; all
    VPU-touched tensors stay float32."""
    def linear(k, fan_in, fan_out):
        kw, kb = jax.random.split(k)
        bound = 1.0 / math.sqrt(fan_in)
        w = jax.random.uniform(kw, (fan_in, fan_out), jnp.float32, -bound, bound)
        b = jax.random.uniform(kb, (1, fan_out), jnp.float32, -bound, bound)
        return w, b

    k1, k2, k3, k4 = jax.random.split(key, 4)
    w1, b1 = linear(k1, input_dims, fc1_dims)
    w2, b2 = linear(k2, fc1_dims, fc2_dims)
    w_mu, b_mu = linear(k3, fc2_dims, n_actions)
    w_sigma, b_sigma = linear(k4, fc2_dims, n_actions)

    # Fuse mu|sigma heads and zero-pad the out-dim to HEAD_PAD (lane-dense output).
    w_head = jnp.zeros((fc2_dims, HEAD_PAD), jnp.float32)
    w_head = w_head.at[:, :n_actions].set(w_mu)
    w_head = w_head.at[:, n_actions:2 * n_actions].set(w_sigma)
    b_head = jnp.zeros((1, HEAD_PAD), jnp.float32)
    b_head = b_head.at[:, :n_actions].set(b_mu)
    b_head = b_head.at[:, n_actions:2 * n_actions].set(b_sigma)

    return dict(w1=w1, b1=b1,
                w2=w2.astype(jnp.bfloat16), b2=b2,
                w_head=w_head.astype(jnp.bfloat16), b_head=b_head)


# -------------------- pure-JAX references (same quantized params) -------------------

def actor_forward_ref(state, params, n_actions):
    w1 = params["w1"]
    h1 = params["b1"]
    for d in range(state.shape[1]):
        h1 = h1 + state[:, d:d + 1] * w1[d:d + 1, :]
    h1 = jnp.maximum(h1, 0.0)
    h2 = jnp.maximum(h1 @ params["w2"].astype(jnp.float32) + params["b2"], 0.0)
    head = h2 @ params["w_head"].astype(jnp.float32) + params["b_head"]
    mu = head[:, :n_actions]
    sigma = jnp.clip(head[:, n_actions:2 * n_actions], SIGMA_MIN, SIGMA_MAX)
    return mu, sigma


def actor_sample_ref(state, params, noise, max_action, n_actions):
    mu, sigma = actor_forward_ref(state, params, n_actions)
    a_raw = mu + sigma * noise
    t = jnp.tanh(a_raw)
    action = t * max_action
    log_prob = -0.5 * noise ** 2 - jnp.log(sigma) - 0.5 * math.log(2.0 * math.pi)
    log_prob = log_prob - jnp.log(max_action * (1.0 - t ** 2) + SIGMA_MIN)
    return action, jnp.sum(log_prob, axis=1, keepdims=True)


if __name__ == "__main__":
    # Pendulum-v1: observation dim = 3, |action| <= 2.0; module default n_actions = 2.
    batch, input_dims, fc1_dims, fc2_dims, n_actions = 8, 3, 256, 256, 2
    max_action = 2.0

    key = jax.random.PRNGKey(0)
    k_params, k_state, k_noise = jax.random.split(key, 3)
    params = init_actor_params(k_params, input_dims, fc1_dims, fc2_dims, n_actions)
    state = jax.random.normal(k_state, (batch, input_dims), jnp.float32)
    noise = jax.random.normal(k_noise, (batch, n_actions), jnp.float32)

    # forward(): (mu, sigma)
    mu, sigma = actor_forward(state, params, n_actions)
    jax.block_until_ready((mu, sigma))
    mu_ref, sigma_ref = actor_forward_ref(state, params, n_actions)
    assert mu.shape == (batch, n_actions) and sigma.shape == (batch, n_actions)
    assert jnp.allclose(mu, mu_ref, atol=1e-4, rtol=1e-4)
    assert jnp.allclose(sigma, sigma_ref, atol=1e-4, rtol=1e-4)
    # Range check in float32 space (float32(1e-6) < python-double 1e-6, which is
    # what broke the previous version's assert).
    assert bool(jnp.all(sigma >= jnp.float32(SIGMA_MIN)))
    assert bool(jnp.all(sigma <= jnp.float32(SIGMA_MAX)))

    # sample_normal(): fused reparameterized sample + tanh squash + log-prob.
    action, log_probs = actor_sample_normal(state, params, noise, max_action,
                                            n_actions)
    jax.block_until_ready((action, log_probs))
    action_ref, log_probs_ref = actor_sample_ref(state, params, noise,
                                                 max_action, n_actions)
    assert action.shape == (batch, n_actions) and log_probs.shape == (batch, 1)
    assert jnp.allclose(action, action_ref, atol=1e-4, rtol=1e-4)
    assert jnp.allclose(log_probs, log_probs_ref, atol=5e-2, rtol=5e-2)
    assert bool(jnp.all(jnp.abs(action) <= jnp.float32(max_action)))

    print("KERNEL_OK")
</pallas_src>

<mosaic_0001>
module attributes {stable_mosaic.version = 11 : i64} {
  func.func @actor_fwd_kernel(%arg0: memref<8x3xf32, #tpu.memory_space<vmem>>, %arg1: memref<3x256xf32, #tpu.memory_space<vmem>>, %arg2: memref<1x256xf32, #tpu.memory_space<vmem>>, %arg3: memref<256x256xbf16, #tpu.memory_space<vmem>>, %arg4: memref<1x256xf32, #tpu.memory_space<vmem>>, %arg5: memref<256x128xbf16, #tpu.memory_space<vmem>>, %arg6: memref<1x128xf32, #tpu.memory_space<vmem>>, %arg7: memref<8x128xf32, #tpu.memory_space<vmem>>) attributes {dimension_semantics = [], scalar_prefetch = 0 : i64, scratch_operands = 0 : i64, tpu.core_type = #tpu.core_type<tc>} {
    %c0 = arith.constant 0 : index
    %c0_0 = arith.constant 0 : index
    %0 = vector.load %arg0[%c0, %c0_0] : memref<8x3xf32, #tpu.memory_space<vmem>>, vector<8x3xf32>
    %c0_1 = arith.constant 0 : index
    %c0_2 = arith.constant 0 : index
    %1 = vector.load %arg1[%c0_1, %c0_2] : memref<3x256xf32, #tpu.memory_space<vmem>>, vector<3x256xf32>
    %c0_3 = arith.constant 0 : index
    %c0_4 = arith.constant 0 : index
    %2 = vector.load %arg2[%c0_3, %c0_4] : memref<1x256xf32, #tpu.memory_space<vmem>>, vector<1x256xf32>
    %3 = vector.extract_strided_slice %0 {offsets = [0, 0], sizes = [8, 1], strides = [1, 1]} : vector<8x3xf32> to vector<8x1xf32>
    %4 = vector.extract_strided_slice %1 {offsets = [0, 0], sizes = [1, 256], strides = [1, 1]} : vector<3x256xf32> to vector<1x256xf32>
    %5 = vector.broadcast %3 : vector<8x1xf32> to vector<8x256xf32>
    %6 = vector.broadcast %4 : vector<1x256xf32> to vector<8x256xf32>
    %7 = arith.mulf %5, %6 : vector<8x256xf32>
    %8 = vector.broadcast %2 : vector<1x256xf32> to vector<8x256xf32>
    %9 = arith.addf %8, %7 : vector<8x256xf32>
    %10 = vector.extract_strided_slice %0 {offsets = [0, 1], sizes = [8, 1], strides = [1, 1]} : vector<8x3xf32> to vector<8x1xf32>
    %11 = vector.extract_strided_slice %1 {offsets = [1, 0], sizes = [1, 256], strides = [1, 1]} : vector<3x256xf32> to vector<1x256xf32>
    %12 = vector.broadcast %10 : vector<8x1xf32> to vector<8x256xf32>
    %13 = vector.broadcast %11 : vector<1x256xf32> to vector<8x256xf32>
    %14 = arith.mulf %12, %13 : vector<8x256xf32>
    %15 = arith.addf %9, %14 : vector<8x256xf32>
    %16 = vector.extract_strided_slice %0 {offsets = [0, 2], sizes = [8, 1], strides = [1, 1]} : vector<8x3xf32> to vector<8x1xf32>
    %17 = vector.extract_strided_slice %1 {offsets = [2, 0], sizes = [1, 256], strides = [1, 1]} : vector<3x256xf32> to vector<1x256xf32>
    %18 = vector.broadcast %16 : vector<8x1xf32> to vector<8x256xf32>
    %19 = vector.broadcast %17 : vector<1x256xf32> to vector<8x256xf32>
    %20 = arith.mulf %18, %19 : vector<8x256xf32>
    %21 = arith.addf %15, %20 : vector<8x256xf32>
    %cst = arith.constant 0.000000e+00 : f32
    %22 = vector.broadcast %cst : f32 to vector<8x256xf32>
    %23 = arith.maximumf %21, %22 : vector<8x256xf32>
    %c0_5 = arith.constant 0 : index
    %c0_6 = arith.constant 0 : index
    %24 = vector.load %arg3[%c0_5, %c0_6] : memref<256x256xbf16, #tpu.memory_space<vmem>>, vector<256x256xbf16>
    %25 = arith.extf %24 : vector<256x256xbf16> to vector<256x256xf32>
    %cst_7 = arith.constant dense<0.000000e+00> : vector<8x256xf32>
    %26 = tpu.matmul %23, %25, %cst_7 {dimension_numbers = #tpu.dot_dimension_numbers<[1], [0], [0], [1], [0, 0, 1, 1], [], []>} : vector<8x256xf32>, vector<256x256xf32>, vector<8x256xf32> -> vector<8x256xf32>
    %c0_8 = arith.constant 0 : index
    %c0_9 = arith.constant 0 : index
    %27 = vector.load %arg4[%c0_8, %c0_9] : memref<1x256xf32, #tpu.memory_space<vmem>>, vector<1x256xf32>
    %28 = vector.broadcast %27 : vector<1x256xf32> to vector<8x256xf32>
    %29 = arith.addf %26, %28 : vector<8x256xf32>
    %cst_10 = arith.constant 0.000000e+00 : f32
    %30 = vector.broadcast %cst_10 : f32 to vector<8x256xf32>
    %31 = arith.maximumf %29, %30 : vector<8x256xf32>
    %c0_11 = arith.constant 0 : index
    %c0_12 = arith.constant 0 : index
    %32 = vector.load %arg5[%c0_11, %c0_12] : memref<256x128xbf16, #tpu.memory_space<vmem>>, vector<256x128xbf16>
    %33 = arith.extf %32 : vector<256x128xbf16> to vector<256x128xf32>
    %cst_13 = arith.constant dense<0.000000e+00> : vector<8x128xf32>
    %34 = tpu.matmul %31, %33, %cst_13 {dimension_numbers = #tpu.dot_dimension_numbers<[1], [0], [0], [1], [0, 0, 1, 1], [], []>} : vector<8x256xf32>, vector<256x128xf32>, vector<8x128xf32> -> vector<8x128xf32>
    %c0_14 = arith.constant 0 : index
    %c0_15 = arith.constant 0 : index
    %35 = vector.load %arg6[%c0_14, %c0_15] : memref<1x128xf32, #tpu.memory_space<vmem>>, vector<1x128xf32>
    %36 = vector.broadcast %35 : vector<1x128xf32> to vector<8x128xf32>
    %37 = arith.addf %34, %36 : vector<8x128xf32>
    %38 = tpu.iota {dimensions = array<i32: 1>} : vector<8x128xi32>
    %c2_i32 = arith.constant 2 : i32
    %39 = vector.broadcast %c2_i32 : i32 to vector<8x128xi32>
    %40 = arith.cmpi sge, %38, %39 : vector<8x128xi32>
    %c4_i32 = arith.constant 4 : i32
    %41 = vector.broadcast %c4_i32 : i32 to vector<8x128xi32>
    %42 = arith.cmpi slt, %38, %41 : vector<8x128xi32>
    %43 = arith.andi %40, %42 : vector<8x128xi1>
    %cst_16 = arith.constant 9.99999997E-7 : f32
    %cst_17 = arith.constant 1.000000e+00 : f32
    %44 = vector.broadcast %cst_16 : f32 to vector<8x128xf32>
    %45 = arith.maximumf %44, %37 : vector<8x128xf32>
    %46 = vector.broadcast %cst_17 : f32 to vector<8x128xf32>
    %47 = arith.minimumf %46, %45 : vector<8x128xf32>
    %48 = arith.select %43, %47, %37 : vector<8x128xi1>, vector<8x128xf32>
    %c0_18 = arith.constant 0 : index
    %c0_19 = arith.constant 0 : index
    %49 = vector.load %arg7[%c0_18, %c0_19] : memref<8x128xf32, #tpu.memory_space<vmem>>, vector<8x128xf32>
    tpu.vector_store %arg7[%c0_18, %c0_19], %48 {strides = array<i32>} : memref<8x128xf32, #tpu.memory_space<vmem>>, vector<8x128xf32>,
    return
  }
}

</mosaic_0001>

<bundles_post_ra>
// kernel: tpu_custom_call.1
= control target key start
LH: loop header
LB: loop body
LE: loop exit
PB: predicated region body
PF: predicated region fallthrough
CT: control target
= control target key end

     0   :  { %12 = vsyncpa [#allocation3], 0  ;;  %s976_s0 = inlined_call_operand.vmem [shape: f32[8,3], index: 0, kind: input, shape index: {}]   ;;  %s977_s1 = inlined_call_operand.vmem [shape: f32[3,256], index: 1, kind: input, shape index: {}]   ;;  %s978_s2 = inlined_call_operand.vmem [shape: f32[1,256], index: 2, kind: input, shape index: {}]   ;;  %s979_s3 = inlined_call_operand.hbm [shape: bf16[256,256], index: 3, kind: input, shape index: {}]   ;;  %s980_s4 = inlined_call_operand.vmem [shape: f32[1,256], index: 4, kind: input, shape index: {}]   ;;  %s981_s5 = inlined_call_operand.hbm [shape: bf16[256,128], index: 5, kind: input, shape index: {}]   ;;  %s982_s6 = inlined_call_operand.vmem [shape: f32[1,128], index: 6, kind: input, shape index: {}]   ;;  %s983_s7 = inlined_call_operand.hbm [shape: f32[8,128], index: 7, kind: output, shape index: {}]  }
   0x1   :  { %13 = vsyncpa [#allocation6], 0 }
   0x2   :  { %14 = vsyncpa [#allocation4], 0  ;;  %s875_s24 = smov [#allocation2]   ;;  %s803_s28 = scalar_lea.hbm %s979_s3, 4096 }
   0x3   :  { %s26_s25 = sshll.u32 %s875_s24, 4  ;;  %p804_p0 = scmp.ne.s32.totalorder %s979_s3, %s803_s28  ;;  %s27_s25 = int_to_ptr.vmem [resolvable:$true] %s26_s25 }
   0x4   :  { %p807_p1 = scmp.lt.u32.totalorder %s803_s28, %s979_s3 }
   0x6   :  { %p809_p2 = pnand %p807_p1, %p804_p0 }
   0x8   :  { %812 = shalt.err (!%p809_p2)
}
   0x9   :  { %s813_s10 = scalar_lea.vmem %s27_s25, 4096  ;;  %p818_p4 = scmp.lt.s32.totalorder %s27_s25, %s27_s25 }
   0xa   :  { %p814_p3 = scmp.ne.s32.totalorder %s27_s25, %s813_s10  ;;  %p819_p5 = scmp.lt.s32.totalorder %s813_s10, %s813_s10 }
   0xc   :  { %p820_p6 = por %p819_p5, %p818_p4 }
   0xe   :  { %p821_p7 = pnand %p820_p6, %p814_p3 }
  0x10   :  { %824 = shalt.err (!%p821_p7)
}
  0x11   :  { %s876_s11 = smov 128   ;;  %s877_s12 = smov 8  }
  0x12   :  { %32 = dma.hbm_to_vmem [thread:$0]  %s979_s3, 4096, %s27_s25, [#allocation3], %s876_s11, %s876_s11, %s877_s12  }
  0x13   :  { %s878_s15 = smov [#allocation5]   ;;  %s825_s19 = scalar_lea.hbm %s981_s5, 2048 }
  0x14   :  { %s40_s16 = sshll.u32 %s878_s15, 4  ;;  %p826_p8 = scmp.ne.s32.totalorder %s981_s5, %s825_s19  ;;  %s41_s16 = int_to_ptr.vmem [resolvable:$true] %s40_s16 }
  0x15   :  { %p829_p9 = scmp.lt.u32.totalorder %s825_s19, %s981_s5 }
  0x17   :  { %p831_p10 = pnand %p829_p9, %p826_p8 }
  0x19   :  { %834 = shalt.err (!%p831_p10)
}
  0x1a   :  { %s835_s24 = scalar_lea.vmem %s41_s16, 2048  ;;  %p840_p12 = scmp.lt.s32.totalorder %s41_s16, %s41_s16 }
  0x1b   :  { %p836_p11 = scmp.ne.s32.totalorder %s41_s16, %s835_s24  ;;  %p841_p13 = scmp.lt.s32.totalorder %s835_s24, %s835_s24 }
  0x1d   :  { %p842_p0 = por %p841_p13, %p840_p12 }
  0x1f   :  { %p843_p1 = pnand %p842_p0, %p836_p11 }
  0x21   :  { %846 = shalt.err (!%p843_p1)
}
  0x22   :  { %s879_s3 = smov 64   ;;  %s880_s25 = smov 4  }
  0x23   :  { %46 = dma.hbm_to_vmem [thread:$0]  %s981_s5, 2048, %s41_s16, [#allocation6], %s879_s3, %s879_s3, %s880_s25  }
  0x24   :  { %869 = dma.done.wait [#allocation3], 4096  }
  0x25   :  { %870 = vsyncadd [#allocation3], 4294963200 }
  0x26   :  { %871 = dma.done.wait [#allocation6], 2048  }
  0x27   :  { %872 = vsyncadd [#allocation6], 4294965248  ;;  %v881_v0 = vmov 0   ;;  %v882_v1 = vmov 2   ;;  %v55_v2 = vld [vmem:[%s976_s0] sm:$0xff]  ;;  %v883_v7 = vmov 1   ;;  %v64_v49 = vlaneseq }
  0x28   :  { %751 = vset.pattern.permute.xlu0 %v881_v0  ;;  %753 = vset.pattern.permute.xlu1 %v882_v1  ;;  %v755_v3 = vld [vmem:[#allocation2 + $0x4] ss:$8 sps:$4 sm:$0xff]   ;;  %v757_v4 = vld [vmem:[#allocation2] ss:$8 sps:$4 sm:$0xff]   ;;  %v758_v5 = vld [vmem:[#allocation2 + $0x14] ss:$8 sps:$4 sm:$0xff]  }
  0x29   :  { %60 = vperm.xlu0 %751, %v55_v2   ;;  %124 = vperm.xlu1 %753, %v55_v2   ;;  %v760_v6 = vld [vmem:[#allocation2 + $0x10] ss:$8 sps:$4 sm:$0xff]   ;;  %v761_v8 = vld [vmem:[#allocation2 + $0x24] ss:$8 sps:$4 sm:$0xff]   ;;  %v763_v9 = vld [vmem:[#allocation2 + $0x20] ss:$8 sps:$4 sm:$0xff]  }
  0x2a   :  { %614 = vmatprep.subr.bf16.mxu0 %v755_v3  ;;  %v764_v10 = vld [vmem:[#allocation2 + $0x34] ss:$8 sps:$4 sm:$0xff]   ;;  %v766_v11 = vld [vmem:[#allocation2 + $0x30] ss:$8 sps:$4 sm:$0xff]   ;;  %v767_v12 = vld [vmem:[#allocation2 + $0x44] ss:$8 sps:$4 sm:$0xff]  }
  0x2b   :  { %616 = vmatpush1.bf16.msra.mxu0 %v757_v4  ;;  %v769_v13 = vld [vmem:[#allocation2 + $0x40] ss:$8 sps:$4 sm:$0xff]   ;;  %v770_v14 = vld [vmem:[#allocation2 + $0x54] ss:$8 sps:$4 sm:$0xff]   ;;  %v772_v15 = vld [vmem:[#allocation2 + $0x50] ss:$8 sps:$4 sm:$0xff]  }
  0x2c   :  { %618 = vmatprep.subr.bf16.mxu0 %v758_v5  ;;  %v773_v16 = vld [vmem:[#allocation2 + $0x64] ss:$8 sps:$4 sm:$0xff]   ;;  %v775_v20 = vld [vmem:[#allocation2 + $0x60] ss:$8 sps:$4 sm:$0xff]   ;;  %v776_v21 = vld [vmem:[#allocation2 + $0x74] ss:$8 sps:$4 sm:$0xff]  }
  0x2d   :  { %752 = vset.pattern.permute.xlu0 %v883_v7  ;;  %v570_v17 = vld [vmem:[#allocation5 + $0x40] sm:$0xff]   ;;  %v571_v19 = vld [vmem:[#allocation5 + $0x48] sm:$0xff]   ;;  %v572_v23 = vld [vmem:[#allocation5 + $0x50] sm:$0xff]   ;;  %v65_v50 = vshrl.u32 %v64_v49, 7 }
  0x2e   :  { %98 = vperm.xlu0 %752, %v55_v2   ;;  %v500_v18 = vld [vmem:[#allocation5] sm:$0xff]   ;;  %678 = vmatprep.subr.bf16.mxu1 %v570_v17  ;;  %v563_v22 = vld [vmem:[#allocation5 + $0x8] sm:$0xff]   ;;  %v778_v24 = vld [vmem:[#allocation2 + $0x70] ss:$8 sps:$4 sm:$0xff]  }
  0x2f   :  { %620 = vmatpush1.bf16.msra.mxu0 %v760_v6  ;;  %680 = vmatpush3.bf16.msra.mxu1 %v500_v18  ;;  %v779_v25 = vld [vmem:[#allocation2 + $0x84] ss:$8 sps:$4 sm:$0xff]   ;;  %v564_v26 = vld [vmem:[#allocation5 + $0x10] sm:$0xff]   ;;  %v573_v27 = vld [vmem:[#allocation5 + $0x58] sm:$0xff]   ;;  %v66_v51 = vsub.s32 0, %v65_v50  ;;  %v70_v52 = vsub.s32 4, %v65_v50 }
  0x30   :  { %622 = vmatprep.subr.bf16.mxu0 %v761_v8  ;;  %682 = vmatprep.subr.bf16.mxu1 %v571_v19  ;;  %v781_v28 = vld [vmem:[#allocation2 + $0x80] ss:$8 sps:$4 sm:$0xff]   ;;  %v782_v29 = vld [vmem:[#allocation2 + $0x94] ss:$8 sps:$4 sm:$0xff]   ;;  %v784_v32 = vld [vmem:[#allocation2 + $0x90] ss:$8 sps:$4 sm:$0xff]  }
  0x31   :  { %v565_v30 = vld [vmem:[#allocation5 + $0x18] sm:$0xff]   ;;  %v574_v31 = vld [vmem:[#allocation5 + $0x60] sm:$0xff]   ;;  %v575_v35 = vld [vmem:[#allocation5 + $0x68] sm:$0xff]   ;;  %v129_v54 = vsub.s32 2, %v65_v50  ;;  %v133_v55 = vsub.s32 6, %v65_v50  ;;  %v91_v58 = vsub.s32 1, %v65_v50 }
  0x32   :  { %754 = vset.pattern.permute.xlu0 %v882_v1  ;;  %v785_v33 = vld [vmem:[#allocation2 + $0xa4] ss:$8 sps:$4 sm:$0xff]   ;;  %v787_v36 = vld [vmem:[#allocation2 + $0xa0] ss:$8 sps:$4 sm:$0xff]   ;;  %v788_v37 = vld [vmem:[#allocation2 + $0xb4] ss:$8 sps:$4 sm:$0xff]  }
  0x33   :  { %624 = vmatpush1.bf16.msra.mxu0 %v763_v9  ;;  %684 = vmatpush3.bf16.msra.mxu1 %v563_v22  ;;  %v566_v34 = vld [vmem:[#allocation5 + $0x20] sm:$0xff]   ;;  %v567_v38 = vld [vmem:[#allocation5 + $0x28] sm:$0xff]   ;;  %v576_v39 = vld [vmem:[#allocation5 + $0x70] sm:$0xff]   ;;  %v107_v59 = vsub.s32 5, %v65_v50 }
  0x34   :  { %626 = vmatprep.subr.bf16.mxu0 %v764_v10  ;;  %686 = vmatprep.subr.bf16.mxu1 %v572_v23  ;;  %v790_v40 = vld [vmem:[#allocation2 + $0xb0] ss:$8 sps:$4 sm:$0xff]   ;;  %v791_v41 = vld [vmem:[#allocation2 + $0xc4] ss:$8 sps:$4 sm:$0xff]   ;;  %v793_v42 = vld [vmem:[#allocation2 + $0xc0] ss:$8 sps:$4 sm:$0xff]  }
  0x35   :  { %v794_v43 = vld [vmem:[#allocation2 + $0xd4] ss:$8 sps:$4 sm:$0xff]   ;;  %v796_v44 = vld [vmem:[#allocation2 + $0xd0] ss:$8 sps:$4 sm:$0xff]   ;;  %v797_v45 = vld [vmem:[#allocation2 + $0xe4] ss:$8 sps:$4 sm:$0xff]  }
  0x36   :  { %v799_v46 = vld [vmem:[#allocation2 + $0xe0] ss:$8 sps:$4 sm:$0xff]   ;;  %v800_v47 = vld [vmem:[#allocation2 + $0xf4] ss:$8 sps:$4 sm:$0xff]   ;;  %v802_v48 = vld [vmem:[#allocation2 + $0xf0] ss:$8 sps:$4 sm:$0xff]  }
  0x37   :  { %628 = vmatpush1.bf16.msra.mxu0 %v766_v11  ;;  %688 = vmatpush3.bf16.msra.mxu1 %v564_v26  ;;  %v56_v53 = vld [vmem:[%s977_s1] sm:$0x77]  ;;  %v568_v26 = vld [vmem:[#allocation5 + $0x30] sm:$0xff]  }
  0x38   :  { %630 = vmatprep.subr.bf16.mxu0 %v767_v12  ;;  %690 = vmatprep.subr.bf16.mxu1 %v573_v27  ;;  %v67_v56 = vrot.slane %v56_v53, %v66_v51  ;;  %v71_v57 = vrot.slane %v56_v53, %v70_v52  ;;  %v130_v60 = vrot.slane %v56_v53, %v129_v54  ;;  %v57_v62 = vld [vmem:[%s978_s2] sm:$0x3] }
  0x39   :  { %v134_v61 = vrot.slane %v56_v53, %v133_v55  ;;  %v104_v1 = vrot.slane %v56_v53, %v91_v58  ;;  %v108_v2 = vrot.slane %v56_v53, %v107_v59  ;;  %v88_v4 = vrot.slane %v57_v62, %v66_v51  ;;  %v577_v27 = vld [vmem:[#allocation5 + $0x78] sm:$0xff]  }
  0x3a   :  { %v77_v63 = vrot.slane %v67_v56, %v66_v51  ;;  %v81_v0 = vrot.slane %v71_v57, %v66_v51  ;;  %v92_v5 = vrot.slane %v57_v62, %v91_v58  ;;  %v140_v6 = vrot.slane %v130_v60, %v129_v54 }
  0x3b   :  { %632 = vmatpush1.bf16.msra.mxu0 %v769_v13  ;;  %692 = vmatpush3.bf16.msra.mxu1 %v565_v30  ;;  %v144_v7 = vrot.slane %v134_v61, %v129_v54  ;;  %v114_v10 = vrot.slane %v104_v1, %v91_v58  ;;  %v118_v11 = vrot.slane %v108_v2, %v91_v58 }
  0x3c   :  { %634 = vmatprep.subr.bf16.mxu0 %v770_v14  ;;  %694 = vmatprep.subr.bf16.mxu1 %v574_v31 }
  0x3f   :  { %636 = vmatpush1.bf16.msra.mxu0 %v772_v15  ;;  %696 = vmatpush3.bf16.msra.mxu1 %v566_v34 }
  0x40   :  { %638 = vmatprep.subr.bf16.mxu0 %v773_v16  ;;  %698 = vmatprep.subr.bf16.mxu1 %v575_v35 }
  0x43   :  { %640 = vmatpush1.bf16.msra.mxu0 %v775_v20  ;;  %700 = vmatpush3.bf16.msra.mxu1 %v567_v38 }
  0x44   :  { %642 = vmatprep.subr.bf16.mxu0 %v776_v21  ;;  %702 = vmatprep.subr.bf16.mxu1 %v576_v39  ;;  %v474_v39 = vand.u32 127, %v64_v49 }
  0x46   :  { %vm475_vm0 = vcmp.ge.s32.totalorder %v474_v39, 2  ;;  %vm476_vm1 = vcmp.lt.s32.totalorder %v474_v39, 4 }
  0x47   :  { %644 = vmatpush1.bf16.msra.mxu0 %v778_v24  ;;  %704 = vmatpush3.bf16.msra.mxu1 %v568_v26  ;;  %vm477_vm2 = vmand %vm475_vm0, %vm476_vm1 }
  0x48   :  { %646 = vmatprep.subr.bf16.mxu0 %v779_v25  ;;  %706 = vmatprep.subr.bf16.mxu1 %v577_v27 }
  0x4b   :  { %648 = vmatpush1.bf16.msra.mxu0 %v781_v28  ;;  %v569_v28 = vld [vmem:[#allocation5 + $0x38] sm:$0xff]  }
  0x4c   :  { %650 = vmatprep.subr.bf16.mxu0 %v782_v29  ;;  %708 = vmatpush3.bf16.msra.mxu1 %v569_v28  ;;  %v247_v29 = vld [vmem:[%s980_s4] sm:$0x3]  ;;  %s884_s4 = smov [#allocation7]  }
  0x4d   :  { %v252_v30 = vrot.slane %v247_v29, %v66_v51  ;;  %v256_v31 = vrot.slane %v247_v29, %v91_v58  ;;  %s488_s11 = sshll.u32 %s884_s4, 4  ;;  %s489_s11 = int_to_ptr.vmem [resolvable:$true] %s488_s11 }
  0x4e   :  { %s847_s12 = scalar_lea.vmem %s489_s11, 128  ;;  %p852_p3 = scmp.lt.s32.totalorder %s489_s11, %s489_s11 }
  0x4f   :  { %652 = vmatpush1.bf16.msra.mxu0 %v784_v32  ;;  %p848_p2 = scmp.ne.s32.totalorder %s489_s11, %s847_s12  ;;  %p853_p4 = scmp.lt.s32.totalorder %s847_s12, %s847_s12 }
  0x50   :  { %654 = vmatprep.subr.bf16.mxu0 %v785_v33 }
  0x51   :  { %p854_p5 = por %p853_p4, %p852_p3 }
  0x53   :  { %656 = vmatpush1.bf16.msra.mxu0 %v787_v36  ;;  %p855_p6 = pnand %p854_p5, %p848_p2 }
  0x54   :  { %658 = vmatprep.subr.bf16.mxu0 %v788_v37 }
  0x57   :  { %660 = vmatpush1.bf16.msra.mxu0 %v790_v40  ;;  %v498_v40 = vld [vmem:[%s982_s6] ss:$0 sm:$0xff] }
  0x58   :  { %662 = vmatprep.subr.bf16.mxu0 %v791_v41 }
  0x5b   :  { %664 = vmatpush1.bf16.msra.mxu0 %v793_v42 }
  0x5c   :  { %666 = vmatprep.subr.bf16.mxu0 %v794_v43 }
  0x5f   :  { %668 = vmatpush1.bf16.msra.mxu0 %v796_v44 }
  0x60   :  { %670 = vmatprep.subr.bf16.mxu0 %v797_v45 }
  0x63   :  { %672 = vmatpush1.bf16.msra.mxu0 %v799_v46 }
  0x64   :  { %674 = vmatprep.subr.bf16.mxu0 %v800_v47 }
  0x67   :  { %676 = vmatpush1.bf16.msra.mxu0 %v802_v48 }
  0xa8   :  { %v61_v3 = vpop.permute.xlu0 %60  ;;  %v125_v12 = vpop.permute.xlu1 %124 }
  0xa9   :  { %v82_v8 = vmul.f32 %v77_v63, %v61_v3  ;;  %v83_v9 = vmul.f32 %v81_v0, %v61_v3  ;;  %v145_v14 = vmul.f32 %v140_v6, %v125_v12  ;;  %v146_v15 = vmul.f32 %v144_v7, %v125_v12 }
  0xab   :  { %v95_v16 = vadd.f32 %v88_v4, %v82_v8  ;;  %v96_v17 = vadd.f32 %v92_v5, %v83_v9 }
  0xad   :  { %v99_v13 = vpop.permute.xlu0 %98 }
  0xae   :  { %v119_v18 = vmul.f32 %v114_v10, %v99_v13  ;;  %v120_v19 = vmul.f32 %v118_v11, %v99_v13 }
  0xb0   :  { %v121_v20 = vadd.f32 %v119_v18, %v95_v16  ;;  %v122_v21 = vadd.f32 %v120_v19, %v96_v17 }
  0xb2   :  { %v147_v22 = vadd.f32 %v145_v14, %v121_v20  ;;  %v148_v23 = vadd.f32 %v146_v15, %v122_v21 }
  0xb4   :  { %v149_v24 = vmax.f32 %v147_v22, 0.0  ;;  %v150_v25 = vmax.f32 %v148_v23, 0.0 }
  0xb6   :  { %323 = vmatprep.mubr.f32.mxu0 %v150_v25 }
  0xb7   :  { %324 = vmatmul.mubr.f32.vlgmr.msra.gmra.mrb[0].mxu0 %v149_v24 }
 0x18a   :  { %v325_v32 = vpop.f32.mrb[0].mxu0 }
 0x18b   :  { %v326_v33 = vadd.f32 %v325_v32, %v252_v30  ;;  %v327_v34 = vpop.f32.mrb[1].mxu0 }
 0x18c   :  { %v328_v35 = vadd.f32 %v327_v34, %v256_v31 }
 0x18d   :  { %v330_v37 = vmax.f32 %v326_v33, 0.0 }
 0x18e   :  { %v331_v36 = vmax.f32 %v328_v35, 0.0 }
 0x190   :  { %467 = vmatprep.mubr.f32.mxu1 %v331_v36 }
 0x191   :  { %468 = vmatmul.mubr.f32.vlgmr.msra.gmra.mrb[0].mxu1 %v330_v37 }
 0x264   :  { %v610_v38 = vpop.f32.mrb[0].mxu1 }
 0x265   :  { %v611_v41 = vpop.f32.mrb[1].mxu1 }
 0x266   :  { %v612_v42 = vadd.f32 %v611_v41, %v610_v38 }
 0x268   :  { %v470_v43 = vadd.f32 %v612_v42, %v498_v40 }
 0x26a   :  { %v478_v44 = vmax.f32 %v470_v43, 1e-06 }
 0x26c   :  { %v479_v45 = vmin.f32 %v478_v44, 1.0 }
 0x26e   :  { %v480_v46 = vsel %vm477_vm2, %v479_v45, %v470_v43 }
 0x26f   :  { %481 = vst [vmem:[#allocation7] sm:$0xff] %v480_v46 }
 0x270   :  { %858 = shalt.err (!%p855_p6)
}
 0x271   :  { %s859_s14 = scalar_lea.hbm %s983_s7, 128 }
 0x272   :  { %p860_p7 = scmp.ne.s32.totalorder %s983_s7, %s859_s14  ;;  %p863_p8 = scmp.lt.u32.totalorder %s859_s14, %s983_s7 }
 0x274   :  { %p865_p9 = pnand %p863_p8, %p860_p7 }
 0x276   :  { %868 = shalt.err (!%p865_p9)
}
 0x277   :  { %491 = dma.vmem_to_hbm [thread:$0]  %s489_s11, 128, %s983_s7, [#allocation4]  }
 0x278   :  { %873 = dma.done.wait [#allocation4], 128  }
 0x279   :  { %874 = vsyncadd [#allocation4], 4294967168 }
 0x27a   :  { %495 = vsyncpa [#allocation3], 1 }
 0x27b   :  { %496 = vsyncpa [#allocation6], 1 }
 0x27c   :  { %497 = vsyncpa [#allocation4], 1 }

</bundles_post_ra>
